<compile_context>
chip_gen: v7x
topology: tpu7x:2x2x1
jax: 0.10.0
libtpu: 0.0.40
codegen_flags: <defaults>
</compile_context>

<pallas_src>
import jax
import jax.numpy as jnp
from jax.experimental import pallas as pl
from jax.experimental.pallas import tpu as pltpu


# --------------------------------------------------------------------------- #
# Kernels
# --------------------------------------------------------------------------- #
def _compress_kernel_acc(x_ref, mt_ref, o_ref, acc_ref):
    # x_ref: (bb, tk, td), mt_ref: (bb, G, tk), o_ref/acc_ref: (bb, G, td)
    k = pl.program_id(2)

    @pl.when(k == 0)
    def _init():
        acc_ref[...] = jnp.zeros_like(acc_ref)

    # out[b, g, d] += sum_t mt[b, g, t] * x[b, t, d]
    acc_ref[...] += jax.lax.dot_general(
        mt_ref[...],
        x_ref[...],
        dimension_numbers=(((2,), (1,)), ((0,), (0,))),
        preferred_element_type=jnp.float32,
    )

    @pl.when(k == pl.num_programs(2) - 1)
    def _finalize():
        o_ref[...] = acc_ref[...].astype(o_ref.dtype)


def _compress_kernel_inplace(x_ref, mt_ref, o_ref):
    # f32 output: accumulate directly into the resident output block
    # (same block index across the reduction axis -> stays in VMEM).
    k = pl.program_id(2)

    @pl.when(k == 0)
    def _init():
        o_ref[...] = jnp.zeros_like(o_ref)

    o_ref[...] += jax.lax.dot_general(
        mt_ref[...],
        x_ref[...],
        dimension_numbers=(((2,), (1,)), ((0,), (0,))),
        preferred_element_type=jnp.float32,
    )


# --------------------------------------------------------------------------- #
# Tiling helpers
# --------------------------------------------------------------------------- #
def _round_up(n, m):
    return ((n + m - 1) // m) * m


def _largest_divisor_leq(n, cap):
    cap = max(1, min(n, cap))
    for d in range(cap, 0, -1):
        if n % d == 0:
            return d
    return 1


def _choose_tk(t, target):
    """Pick the T (reduction) tile and the zero-padded T extent.

    tk is a multiple of 256 (or 128) so the transposed m tile is lane-dense
    and MXU K passes are full, unless the whole (8-aligned) T fits in a single
    tile, in which case the block spans the full extent (allowed by (8,128)).
    """
    target = max(128, int(target))
    if t <= target or t < 256:
        tk = _round_up(t, 8)
        return tk, tk
    gran = 256 if target >= 256 else 128
    tk = max(gran, (target // gran) * gran)
    return tk, _round_up(t, tk)


def _chip_info():
    """(vmem_capacity_bytes, tensorcores_per_chip) with conservative fallbacks."""
    vmem_cap = 64 * 1024 * 1024  # conservative default (v7x size)
    num_cores = 1
    try:
        kind = jax.devices()[0].device_kind.lower()
        if "v7" in kind or "7x" in kind:
            vmem_cap, num_cores = 64 * 1024 * 1024, 2
        elif "v6" in kind or "v5" in kind or "lite" in kind:
            vmem_cap, num_cores = 128 * 1024 * 1024, 1
    except Exception:
        pass
    try:  # authoritative query when available
        info = pltpu.get_tpu_info()
        vmem_cap = int(getattr(info, "vmem_capacity_bytes", vmem_cap))
        for attr in ("tensorcores_per_chip", "num_cores", "core_count"):
            v = getattr(info, attr, None)
            if isinstance(v, int) and v > 0:
                num_cores = v
                break
    except Exception:
        pass
    return vmem_cap, num_cores


# --------------------------------------------------------------------------- #
# Wrapper
# --------------------------------------------------------------------------- #
def compress_forward(x, m, *, tk_target=512, bytes_per_step_target=4 << 20,
                     m_is_transposed=False):
    """x: (B, T, D), m: (B, T, G) -> out: (B, G, D).

    Matches Compress.forward: matmul(x.transpose(1,2), m).transpose(1,2).
    Set m_is_transposed=True to pass m already laid out as (B, G, T).
    """
    B, T, D = x.shape
    if m_is_transposed:
        Bm, G, Tm = m.shape
        m_t = m
    else:
        Bm, Tm, G = m.shape
        m_t = jnp.transpose(m, (0, 2, 1))  # (B, G, T): lane-dense kernel tiles
    assert B == Bm and T == Tm, (x.shape, m.shape)

    out_dtype = jnp.result_type(x.dtype, m.dtype)
    use_inplace = out_dtype == jnp.float32

    x_bytes = jnp.dtype(x.dtype).itemsize
    m_bytes = jnp.dtype(m_t.dtype).itemsize
    o_bytes = jnp.dtype(out_dtype).itemsize

    vmem_cap, num_cores = _chip_info()
    budget = min(vmem_cap * 3 // 4, 96 * 1024 * 1024)  # ~48 MiB v7x, ~96 MiB v5e/v6e

    # --- tile selection ---------------------------------------------------- #
    d_pad = _round_up(D, 128)       # lane padding of x / out tiles
    g_sub = _round_up(G, 8)         # sublane padding of the transposed m tile

    bb_cap = B
    if num_cores >= 2 and B >= 2:
        bb_cap = max(1, B // 2)     # keep >=2 blocks on the batch-parallel axis
    bb = _largest_divisor_leq(B, bb_cap)

    # Bytes-per-grid-step driven reduction-tile target (amortize ~0.35us/step).
    per_tk_row = max(1, bb * (d_pad * x_bytes + g_sub * m_bytes))
    tk_goal = max(int(tk_target),
                  _round_up(-(-int(bytes_per_step_target) // per_tk_row), 256))
    tk_goal = min(tk_goal, 4096)
    tk, t_pad = _choose_tk(T, tk_goal)

    # Optional D split: on multi-core chips with unit batch, give the second
    # TensorCore work via a second "parallel" grid axis over D.
    td = D
    if num_cores >= 2 and B == 1 and D % 128 == 0 and D >= 256:
        for cand in range(D // 2, 127, -128):
            if D % cand == 0:
                td = cand
                break

    def footprint(bb_, tk_, td_):
        # Padded (lane->128, sublane->8) double-buffered VMEM footprint.
        x_tile = bb_ * _round_up(tk_, 8) * _round_up(td_, 128) * x_bytes
        m_tile = bb_ * g_sub * _round_up(tk_, 128) * m_bytes
        o_tile = bb_ * g_sub * _round_up(td_, 128) * o_bytes
        acc = 0 if use_inplace else bb_ * g_sub * _round_up(td_, 128) * 4
        return 2 * (x_tile + m_tile + o_tile) + acc

    while footprint(bb, tk, td) > budget and bb > 1:
        bb = _largest_divisor_leq(B, bb - 1)
    if footprint(bb, tk, td) > budget and tk == t_pad and t_pad > 256:
        # Single full-T tile too large: switch to a lane-dense 256 tiling.
        tk = 256
        t_pad = _round_up(T, 256)
    while footprint(bb, tk, td) > budget and tk > 128 and tk % 256 == 0:
        tk //= 2  # halving preserves divisibility of t_pad and 128-alignment

    # --- zero-pad T (zero m columns contribute nothing -> exact) ------------ #
    if t_pad != T:
        x = jnp.pad(x, ((0, 0), (0, t_pad - T), (0, 0)))
        m_t = jnp.pad(m_t, ((0, 0), (0, 0), (0, t_pad - T)))

    grid = (B // bb, D // td, t_pad // tk)

    cost = pl.CostEstimate(
        flops=2 * B * T * G * D,
        transcendentals=0,
        bytes_accessed=(x_bytes * B * T * D + m_bytes * B * T * G
                        + o_bytes * B * G * D),
    )

    kernel = _compress_kernel_inplace if use_inplace else _compress_kernel_acc
    scratch = [] if use_inplace else [pltpu.VMEM((bb, G, td), jnp.float32)]

    vmem_limit = int(min(max(footprint(bb, tk, td) + (8 << 20), 32 << 20),
                         vmem_cap - (8 << 20)))

    return pl.pallas_call(
        kernel,
        out_shape=jax.ShapeDtypeStruct((B, G, D), out_dtype),
        grid_spec=pltpu.PrefetchScalarGridSpec(
            num_scalar_prefetch=0,
            grid=grid,
            in_specs=[
                pl.BlockSpec((bb, tk, td), lambda b, d, k: (b, k, d)),  # x
                pl.BlockSpec((bb, G, tk), lambda b, d, k: (b, 0, k)),   # m^T
            ],
            out_specs=pl.BlockSpec((bb, G, td), lambda b, d, k: (b, 0, d)),
            scratch_shapes=scratch,
        ),
        compiler_params=pltpu.CompilerParams(
            dimension_semantics=("parallel", "parallel", "arbitrary"),
            vmem_limit_bytes=vmem_limit,
        ),
        cost_estimate=cost,
    )(x, m_t)


# TODO(synk): Compress.mean / Compress.reverse are separate methods (not part
# of forward) and are not implemented here.


if __name__ == "__main__":
    k0, k1, k2, k3 = jax.random.split(jax.random.PRNGKey(0), 4)

    # Small config matching the module layout: x (B, T, D), m (B, T, G).
    B, T, D, G = 2, 16, 32, 8
    x = jax.random.normal(k0, (B, T, D), dtype=jnp.float32)
    m = jax.random.uniform(k1, (B, T, G), dtype=jnp.float32)

    out = jax.block_until_ready(compress_forward(x, m))
    ref = jnp.einsum("btd,btg->bgd", x, m,
                     precision=jax.lax.Precision.HIGHEST)
    assert out.shape == (B, G, D), out.shape
    assert jnp.allclose(out, ref, atol=1e-4, rtol=1e-4), float(
        jnp.max(jnp.abs(out - ref)))

    # Larger bf16 shape exercising the lane-dense m layout, T tiling (3 k-steps
    # through the accumulator path), batch blocking and T zero-padding (600->768).
    B2, T2, D2, G2 = 4, 600, 128, 16
    x2 = jax.random.normal(k2, (B2, T2, D2), dtype=jnp.bfloat16)
    m2 = jax.random.uniform(k3, (B2, T2, G2), dtype=jnp.bfloat16)
    out2 = jax.block_until_ready(
        compress_forward(x2, m2, tk_target=256, bytes_per_step_target=0))
    ref2 = jnp.einsum("btd,btg->bgd",
                      x2.astype(jnp.float32), m2.astype(jnp.float32),
                      precision=jax.lax.Precision.HIGHEST).astype(jnp.bfloat16)
    assert out2.shape == (B2, G2, D2), out2.shape
    assert jnp.allclose(out2.astype(jnp.float32), ref2.astype(jnp.float32),
                        atol=2e-2, rtol=2e-2), float(
        jnp.max(jnp.abs(out2.astype(jnp.float32) - ref2.astype(jnp.float32))))

    print("KERNEL_OK")
</pallas_src>

<mosaic_0001>
module attributes {stable_mosaic.version = 11 : i64} {
  func.func @_compress_kernel_inplace(%arg0: i32, %arg1: i32, %arg2: i32, %arg3: memref<2x16x32xf32, #tpu.memory_space<vmem>>, %arg4: memref<2x8x16xf32, #tpu.memory_space<vmem>>, %arg5: memref<2x8x32xf32, #tpu.memory_space<vmem>>) attributes {dimension_semantics = [#tpu.dimension_semantics<parallel>, #tpu.dimension_semantics<parallel>, #tpu.dimension_semantics<arbitrary>], iteration_bounds = array<i64: 1, 1, 1>, scalar_prefetch = 0 : i64, scratch_operands = 0 : i64, tpu.core_type = #tpu.core_type<tc>, window_params = [{transform_indices = @transform_0, window_bounds = array<i64: 2, 16, 32>}, {transform_indices = @transform_1, window_bounds = array<i64: 2, 8, 16>}, {transform_indices = @transform_2, window_bounds = array<i64: 2, 8, 32>}]} {
    %c0_i32 = arith.constant 0 : i32
    %0 = arith.cmpi eq, %arg2, %c0_i32 : i32
    %1 = arith.extui %0 : i1 to i32
    %c0_i32_0 = arith.constant 0 : i32
    %2 = arith.cmpi ne, %1, %c0_i32_0 : i32
    scf.if %2 {
      %cst_12 = arith.constant 0.000000e+00 : f32
      %9 = vector.broadcast %cst_12 : f32 to vector<2x8x32xf32>
      %c0_13 = arith.constant 0 : index
      %c0_14 = arith.constant 0 : index
      %c0_15 = arith.constant 0 : index
      %10 = vector.load %arg5[%c0_13, %c0_14, %c0_15] : memref<2x8x32xf32, #tpu.memory_space<vmem>>, vector<2x8x32xf32>
      tpu.vector_store %arg5[%c0_13, %c0_14, %c0_15], %9 {strides = array<i32>} : memref<2x8x32xf32, #tpu.memory_space<vmem>>, vector<2x8x32xf32>,
    } else {
    }
    %c0 = arith.constant 0 : index
    %c0_1 = arith.constant 0 : index
    %c0_2 = arith.constant 0 : index
    %3 = vector.load %arg5[%c0, %c0_1, %c0_2] : memref<2x8x32xf32, #tpu.memory_space<vmem>>, vector<2x8x32xf32>
    %c0_3 = arith.constant 0 : index
    %c0_4 = arith.constant 0 : index
    %c0_5 = arith.constant 0 : index
    %4 = vector.load %arg4[%c0_3, %c0_4, %c0_5] : memref<2x8x16xf32, #tpu.memory_space<vmem>>, vector<2x8x16xf32>
    %c0_6 = arith.constant 0 : index
    %c0_7 = arith.constant 0 : index
    %c0_8 = arith.constant 0 : index
    %5 = vector.load %arg3[%c0_6, %c0_7, %c0_8] : memref<2x16x32xf32, #tpu.memory_space<vmem>>, vector<2x16x32xf32>
    %cst = arith.constant dense<0.000000e+00> : vector<2x8x32xf32>
    %6 = tpu.matmul %4, %5, %cst {dimension_numbers = #tpu.dot_dimension_numbers<[2], [1], [1], [2], [0, 0, 0, 1, 1, 2], [0], [0]>} : vector<2x8x16xf32>, vector<2x16x32xf32>, vector<2x8x32xf32> -> vector<2x8x32xf32>
    %7 = arith.addf %3, %6 : vector<2x8x32xf32>
    %c0_9 = arith.constant 0 : index
    %c0_10 = arith.constant 0 : index
    %c0_11 = arith.constant 0 : index
    %8 = vector.load %arg5[%c0_9, %c0_10, %c0_11] : memref<2x8x32xf32, #tpu.memory_space<vmem>>, vector<2x8x32xf32>
    tpu.vector_store %arg5[%c0_9, %c0_10, %c0_11], %7 {strides = array<i32>} : memref<2x8x32xf32, #tpu.memory_space<vmem>>, vector<2x8x32xf32>,
    return
  }
  func.func @transform_0(%arg0: i32, %arg1: i32, %arg2: i32) -> (i32, i32, i32) {
    %c0_i32 = arith.constant 0 : i32
    return %arg0, %arg2, %arg1 : i32, i32, i32
  }
  func.func @transform_1(%arg0: i32, %arg1: i32, %arg2: i32) -> (i32, i32, i32) {
    %c0_i32 = arith.constant 0 : i32
    %c0_i32_0 = arith.constant 0 : i32
    return %arg0, %c0_i32, %arg2 : i32, i32, i32
  }
  func.func @transform_2(%arg0: i32, %arg1: i32, %arg2: i32) -> (i32, i32, i32) {
    %c0_i32 = arith.constant 0 : i32
    %c0_i32_0 = arith.constant 0 : i32
    return %arg0, %c0_i32, %arg1 : i32, i32, i32
  }
}

</mosaic_0001>

<bundles_post_ra>
// kernel: tpu_custom_call.1
= control target key start
LH: loop header
LB: loop body
LE: loop exit
PB: predicated region body
PF: predicated region fallthrough
CT: control target
= control target key end

     0   :  { %7 = vsyncpa [#allocation3], 0  ;;  %s405_s0 = inlined_call_operand.hbm [shape: f32[2,16,32], index: 0, kind: input, shape index: {}]   ;;  %s406_s1 = inlined_call_operand.hbm [shape: f32[2,8,16], index: 1, kind: input, shape index: {}]   ;;  %s407_s2 = inlined_call_operand.hbm [shape: f32[2,8,32], index: 2, kind: output, shape index: {}]  }
   0x1   :  { %8 = vsyncpa [#allocation6], 0 }
   0x2   :  { %9 = vsyncpa [#allocation4], 0  ;;  %s333_s9 = smov [#allocation2]   ;;  %s261_s13 = scalar_lea.hbm %s405_s0, 512 }
   0x3   :  { %s15_s10 = sshll.u32 %s333_s9, 4  ;;  %p262_p0 = scmp.ne.s32.totalorder %s405_s0, %s261_s13  ;;  %s16_s10 = int_to_ptr.vmem [resolvable:$true] %s15_s10 }
   0x4   :  { %p265_p1 = scmp.lt.u32.totalorder %s261_s13, %s405_s0 }
   0x6   :  { %p267_p2 = pnand %p265_p1, %p262_p0 }
   0x8   :  { %270 = shalt.err (!%p267_p2)
}
   0x9   :  { %s271_s18 = scalar_lea.vmem %s16_s10, 512  ;;  %p276_p4 = scmp.lt.s32.totalorder %s16_s10, %s16_s10 }
   0xa   :  { %p272_p3 = scmp.ne.s32.totalorder %s16_s10, %s271_s18  ;;  %p277_p5 = scmp.lt.s32.totalorder %s271_s18, %s271_s18 }
   0xc   :  { %p278_p6 = por %p277_p5, %p276_p4 }
   0xe   :  { %p279_p7 = pnand %p278_p6, %p272_p3 }
  0x10   :  { %282 = shalt.err (!%p279_p7)
}
  0x11   :  { %s334_s19 = smov 128   ;;  %s335_s20 = smov 8  }
  0x12   :  { %21 = dma.hbm_to_vmem [thread:$0]  %s405_s0, 512, %s16_s10, [#allocation3], %s334_s19, %s334_s19, %s335_s20  }
  0x13   :  { %s336_s23 = smov [#allocation5]   ;;  %s283_s27 = scalar_lea.hbm %s406_s1, 256 }
  0x14   :  { %s27_s24 = sshll.u32 %s336_s23, 4  ;;  %p284_p8 = scmp.ne.s32.totalorder %s406_s1, %s283_s27  ;;  %s28_s24 = int_to_ptr.vmem [resolvable:$true] %s27_s24 }
  0x15   :  { %p287_p9 = scmp.lt.u32.totalorder %s283_s27, %s406_s1 }
  0x17   :  { %p289_p10 = pnand %p287_p9, %p284_p8 }
  0x19   :  { %292 = shalt.err (!%p289_p10)
}
  0x1a   :  { %s293_s4 = scalar_lea.vmem %s28_s24, 256  ;;  %p298_p12 = scmp.lt.s32.totalorder %s28_s24, %s28_s24 }
  0x1b   :  { %p294_p11 = scmp.ne.s32.totalorder %s28_s24, %s293_s4  ;;  %p299_p13 = scmp.lt.s32.totalorder %s293_s4, %s293_s4 }
  0x1d   :  { %p300_p0 = por %p299_p13, %p298_p12 }
  0x1f   :  { %p301_p1 = pnand %p300_p0, %p294_p11 }
  0x21   :  { %304 = shalt.err (!%p301_p1)
}
  0x22   :  { %33 = dma.hbm_to_vmem [thread:$0]  %s406_s1, 256, %s28_s24, [#allocation6], %s334_s19, %s334_s19, %s335_s20  }
  0x23   :  { %327 = dma.done.wait [#allocation3], 512  }
  0x24   :  { %328 = vsyncadd [#allocation3], 4294966784 }
  0x25   :  { %329 = dma.done.wait [#allocation6], 256  }
  0x26   :  { %330 = vsyncadd [#allocation6], 4294967040  ;;  %vm44_vm0 = vcmask 261120   ;;  %v337_v0 = vmov 0.0|0.0   ;;  %v338_v1 = vmov 0.0   ;;  %vm339_vm1 = vmmov 0  }
  0x27   :  { %247 = vmatprep.subr.bf16.mxu0 %v337_v0  ;;  %250 = vmatprep.subr.bf16.mxu1 %v337_v0  ;;  %45 = vst.msk [vmem:[#allocation7] sm:$0xff] %vm44_vm0, %v338_v1  ;;  %46 = vst.msk [vmem:[#allocation7 + $0x8] sm:$0xff] %vm44_vm0, %v338_v1  ;;  %v51_v2 = vld [vmem:[#allocation2] sm:$0xff]  ;;  %v52_v3 = vld [vmem:[#allocation2 + $0x8] sm:$0xff]  ;;  %vm55_vm2 = vcmask 130048   ;;  %s340_s1 = smov [#allocation7]  }
  0x28   :  { %237 = vmatprep.mubr.msk.f32.mxu0 %vm339_vm1, %v338_v1  ;;  %244 = vmatprep.mubr.msk.f32.mxu1 %vm339_vm1, %v338_v1  ;;  %v53_v4 = vld [vmem:[#allocation2 + $0x10] sm:$0xff]  ;;  %v248_v5 = vpack.c.bf16 %v52_v3, %v51_v2  ;;  %v54_v6 = vld [vmem:[#allocation2 + $0x18] sm:$0xff]  ;;  %v49_v8 = vld [vmem:[#allocation5] sm:$0xff]  ;;  %s212_s6 = sshll.u32 %s340_s1, 4  ;;  %s213_s6 = int_to_ptr.vmem [resolvable:$true] %s212_s6 }
  0x29   :  { %v251_v7 = vpack.c.bf16 %v54_v6, %v53_v4  ;;  %v50_v9 = vld [vmem:[#allocation5 + $0x8] sm:$0xff]  ;;  %s305_s7 = scalar_lea.vmem %s213_s6, 256  ;;  %p310_p3 = scmp.lt.s32.totalorder %s213_s6, %s213_s6 }
  0x2a   :  { %249 = vmatpush3.bf16.msra.mxu0 %v248_v5  ;;  %p306_p2 = scmp.ne.s32.totalorder %s213_s6, %s305_s7  ;;  %p311_p4 = scmp.lt.s32.totalorder %s305_s7, %s305_s7 }
  0x2b   :  { %252 = vmatpush3.bf16.msra.mxu1 %v251_v7 }
  0x2c   :  { %p312_p5 = por %p311_p4, %p310_p3 }
  0x2d   :  { %238 = vmatmul.mubr.msk.f32.vlgmr.msra.gmra.mrb[0].mxu0 %vm55_vm2, %v49_v8 }
  0x2e   :  { %245 = vmatmul.mubr.msk.f32.vlgmr.msra.gmra.mrb[0].mxu1 %vm55_vm2, %v50_v9  ;;  %v47_v10 = vld [vmem:[#allocation7] sm:$0xff]  ;;  %v48_v11 = vld [vmem:[#allocation7 + $0x8] sm:$0xff]  ;;  %p313_p6 = pnand %p312_p5, %p306_p2 }
 0x100   :  { %v125_v12 = vpop.f32.mrb[0].mxu0 }
 0x101   :  { %v202_v13 = vadd.f32 %v125_v12, %v47_v10  ;;  %v198_v14 = vpop.f32.mrb[0].mxu1  ;;  %v239_v15 = vpop.f32.mrb[1].mxu0 }
 0x102   :  { %v203_v16 = vadd.f32 %v198_v14, %v48_v11  ;;  %v246_v17 = vpop.f32.mrb[1].mxu1 }
 0x103   :  { %205 = vst.msk [vmem:[#allocation7] sm:$0xff] %vm44_vm0, %v202_v13 }
 0x104   :  { %206 = vst.msk [vmem:[#allocation7 + $0x8] sm:$0xff] %vm44_vm0, %v203_v16 }
 0x105   :  { %316 = shalt.err (!%p313_p6)
}
 0x106   :  { %s317_s10 = scalar_lea.hbm %s407_s2, 256 }
 0x107   :  { %p318_p7 = scmp.ne.s32.totalorder %s407_s2, %s317_s10  ;;  %p321_p8 = scmp.lt.u32.totalorder %s317_s10, %s407_s2 }
 0x109   :  { %p323_p9 = pnand %p321_p8, %p318_p7 }
 0x10b   :  { %326 = shalt.err (!%p323_p9)
}
 0x10c   :  { %218 = dma.vmem_to_hbm [thread:$0]  %s213_s6, 256, %s407_s2, [#allocation4], %s334_s19, %s334_s19, %s335_s20  }
 0x10d   :  { %331 = dma.done.wait [#allocation4], 256  }
 0x10e   :  { %332 = vsyncadd [#allocation4], 4294967040 }
 0x10f   :  { %222 = vsyncpa [#allocation3], 1 }
 0x110   :  { %223 = vsyncpa [#allocation6], 1 }
 0x111   :  { %224 = vsyncpa [#allocation4], 1 }

</bundles_post_ra>
